<compile_context>
chip_gen: v6e
topology: v6e:2x2x1
jax: 0.10.0
libtpu: 0.0.40
codegen_flags: <defaults>
</compile_context>

<pallas_src>
import functools
import math

import jax
import jax.numpy as jnp
from jax.experimental import pallas as pl
from jax.experimental.pallas import tpu as pltpu

EPS = 1e-5
_HIGHEST = jax.lax.Precision.HIGHEST


# ---------------------------------------------------------------------------
# In-kernel helpers
# ---------------------------------------------------------------------------

def _to_f32(v):
    # Skip the no-op convert for f32 inputs (keeps VALU work minimal on v7x).
    return v if v.dtype == jnp.float32 else v.astype(jnp.float32)


def _block_sum_matrix(d, feat):
    """Block-diagonal 0/1 matrix S (feat, feat): S[i, j] = 1 iff i//d == j//d.

    Only used when feat == 128, i.e. d divides 128, so d is a power of two and
    the segment id is just a right shift (cheap, definitely lowerable ops).
    """
    shift = d.bit_length() - 1  # log2(d)
    ri = jax.lax.broadcasted_iota(jnp.int32, (feat, feat), 0)
    ci = jax.lax.broadcasted_iota(jnp.int32, (feat, feat), 1)
    return ((ri >> shift) == (ci >> shift)).astype(jnp.float32)


def _segment_matrices(d, pack, feat):
    """seg (feat, pack) / seg_t (pack, feat) 0/1 matrices for the rare feat>128 case."""
    ri = jax.lax.broadcasted_iota(jnp.int32, (feat, pack), 0)
    ci = jax.lax.broadcasted_iota(jnp.int32, (feat, pack), 1)
    lo = ci * d
    seg = ((ri >= lo) & (ri < lo + d)).astype(jnp.float32)

    rj = jax.lax.broadcasted_iota(jnp.int32, (pack, feat), 0)
    cj = jax.lax.broadcasted_iota(jnp.int32, (pack, feat), 1)
    lo_t = rj * d
    seg_t = ((cj >= lo_t) & (cj < lo_t + d)).astype(jnp.float32)
    return seg, seg_t


def _normalize(x, d, pack):
    """x: (tile_rows, pack*d) f32. Normalize each contiguous d-wide segment."""
    inv_d = 1.0 / d
    if pack == 1:
        mean = jnp.sum(x, axis=-1, keepdims=True) * inv_d
        xc = x - mean
        var = jnp.sum(xc * xc, axis=-1, keepdims=True) * inv_d
        return xc * jax.lax.rsqrt(var + EPS)

    feat = pack * d
    if feat == 128:
        # Direct block-averaging matmuls: mean/var already in broadcast form.
        # Two HIGHEST matmuls total (half of the old stats+broadcast scheme).
        s = _block_sum_matrix(d, feat)
        mean_b = jnp.dot(x, s, precision=_HIGHEST,
                         preferred_element_type=jnp.float32) * inv_d
        xc = x - mean_b
        var_b = jnp.dot(xc * xc, s, precision=_HIGHEST,
                        preferred_element_type=jnp.float32) * inv_d
        return xc * jax.lax.rsqrt(var_b + EPS)

    # Rare case: d < 128 but d does not divide 128 (feat = lcm(d,128) > 128).
    # Keep the original per-segment stats + broadcast-back matmuls here.
    seg, seg_t = _segment_matrices(d, pack, feat)
    mean = jnp.dot(x, seg, precision=_HIGHEST,
                   preferred_element_type=jnp.float32) * inv_d            # (tr, pack)
    mean_b = jnp.dot(mean, seg_t, precision=_HIGHEST,
                     preferred_element_type=jnp.float32)                  # (tr, feat)
    xc = x - mean_b
    var = jnp.dot(xc * xc, seg, precision=_HIGHEST,
                  preferred_element_type=jnp.float32) * inv_d             # (tr, pack)
    inv = jax.lax.rsqrt(var + EPS)
    inv_b = jnp.dot(inv, seg_t, precision=_HIGHEST,
                    preferred_element_type=jnp.float32)                   # (tr, feat)
    return xc * inv_b


def _ln_kernel_bias(x_ref, w_ref, b_ref, o_ref, *, d, pack):
    x = _to_f32(x_ref[...])
    y = _normalize(x, d, pack)
    y = y * _to_f32(w_ref[...]) + _to_f32(b_ref[...])
    o_ref[...] = y if o_ref.dtype == jnp.float32 else y.astype(o_ref.dtype)


def _ln_kernel_nobias(x_ref, w_ref, o_ref, *, d, pack):
    x = _to_f32(x_ref[...])
    y = _normalize(x, d, pack) * _to_f32(w_ref[...])
    o_ref[...] = y if o_ref.dtype == jnp.float32 else y.astype(o_ref.dtype)


# ---------------------------------------------------------------------------
# Host-side sizing helpers
# ---------------------------------------------------------------------------

@functools.lru_cache(maxsize=None)
def _vmem_capacity_bytes():
    try:
        info = pltpu.get_tpu_info()
        return int(getattr(info, "vmem_capacity_bytes", 64 * 1024 * 1024))
    except Exception:
        return 64 * 1024 * 1024  # conservative: v7x per-TensorCore VMEM


def _vmem_params(itemsize):
    """(block_bytes, vmem_limit_bytes) budgeted against this chip's VMEM."""
    cap = _vmem_capacity_bytes()
    vmem_limit = max(32 << 20, min(cap - (16 << 20), 96 << 20))
    # Per grid step: 2x double-buffered input + 2x output blocks (input dtype)
    # plus roughly four block-sized f32 temporaries inside the kernel.
    per_block = 4.0 + 4.0 * (4.0 / itemsize)
    block_bytes = int((vmem_limit - (8 << 20)) / per_block)
    block_bytes = max(1 << 20, min(block_bytes, 8 << 20))
    return block_bytes, int(vmem_limit)


def _choose_pack(d):
    """Fuse `pack` logical rows into one lane-dense physical row when d % 128 != 0."""
    if d % 128 == 0:
        return 1
    pack = 128 // math.gcd(d, 128)
    feat = pack * d
    if feat == 128 or pack <= 8:
        return pack
    return 1  # pathological d (e.g. odd): fall back to masked stores


def _choose_tile_rows(rows_p, feat, itemsize, target_bytes, min_steps=8):
    """Byte-budgeted, sublane-aligned row tile with >= min_steps grid steps if possible."""
    align = 8 if itemsize >= 4 else (16 if itemsize == 2 else 32)
    if rows_p <= align:
        return int(rows_p)  # single full-extent block (always a legal block shape)
    row_bytes = feat * itemsize
    tr = max(align, (target_bytes // row_bytes) // align * align)
    # Guarantee enough grid steps for pipelining / megacore sharding (>=4 per v7x TC).
    max_steps = -(-rows_p // align)
    want_steps = min(min_steps, max_steps)
    if -(-rows_p // tr) < want_steps:
        per_step = -(-rows_p // want_steps)
        tr = max(align, (per_step // align) * align)
    return int(min(tr, rows_p))


# ---------------------------------------------------------------------------
# pallas_call wrapper
# ---------------------------------------------------------------------------

def _layer_norm_2d(x2, w2, b2, *, d, pack, block_bytes, vmem_limit):
    """LayerNorm of x2 (rows_p, pack*d), each d-wide segment normalized separately."""
    rows_p, feat = x2.shape
    itemsize = jnp.dtype(x2.dtype).itemsize
    tr = _choose_tile_rows(rows_p, feat, itemsize, block_bytes)
    grid = (pl.cdiv(rows_p, tr),)

    x_spec = pl.BlockSpec((tr, feat), lambda i: (i, 0))
    p_spec = pl.BlockSpec((1, feat), lambda i: (0, 0))
    o_spec = pl.BlockSpec((tr, feat), lambda i: (i, 0))

    if pack == 1:
        mm_flops = 0
        transc = rows_p
    elif feat == 128:
        mm_flops = 4 * rows_p * feat * feat      # two (tr,feat)x(feat,feat) matmuls
        transc = rows_p * feat
    else:
        mm_flops = 8 * rows_p * feat * pack      # legacy seg/seg_t path
        transc = rows_p * pack
    n_params = 1 if b2 is None else 2
    cost = pl.CostEstimate(
        flops=8 * rows_p * feat + mm_flops,
        transcendentals=transc,
        bytes_accessed=2 * rows_p * feat * itemsize + n_params * feat * itemsize,
    )

    if b2 is None:
        kernel = functools.partial(_ln_kernel_nobias, d=d, pack=pack)
        in_specs = [x_spec, p_spec]
        args = (x2, w2)
    else:
        kernel = functools.partial(_ln_kernel_bias, d=d, pack=pack)
        in_specs = [x_spec, p_spec, p_spec]
        args = (x2, w2, b2)

    return pl.pallas_call(
        kernel,
        out_shape=jax.ShapeDtypeStruct((rows_p, feat), x2.dtype),
        grid_spec=pltpu.PrefetchScalarGridSpec(
            num_scalar_prefetch=0,
            grid=grid,
            in_specs=in_specs,
            out_specs=o_spec,
        ),
        compiler_params=pltpu.CompilerParams(
            dimension_semantics=("parallel",),
            vmem_limit_bytes=int(vmem_limit),
        ),
        cost_estimate=cost,
    )(*args)


@functools.partial(jax.jit, static_argnames=("block_bytes",))
def complex_layer_norm(x, weight, bias=None, *, block_bytes=None):
    """LayerNorm over the last dim of x with weight and optional bias (eps=1e-5)."""
    orig_shape = x.shape
    d = orig_shape[-1]
    rows = 1
    for s in orig_shape[:-1]:
        rows *= int(s)

    itemsize = jnp.dtype(x.dtype).itemsize
    auto_bb, vmem_limit = _vmem_params(itemsize)
    bb = auto_bb if block_bytes is None else int(block_bytes)

    xf = x.reshape(rows, d)
    pack = _choose_pack(d)
    rows_main = (rows // pack) * pack

    outs = []
    if rows_main > 0:
        xm = xf[:rows_main].reshape(rows_main // pack, pack * d)
        w2 = weight.reshape(1, d)
        b2 = None if bias is None else bias.reshape(1, d)
        if pack > 1:
            w2 = jnp.tile(w2, (1, pack))
            b2 = None if b2 is None else jnp.tile(b2, (1, pack))
        om = _layer_norm_2d(xm, w2, b2, d=d, pack=pack,
                            block_bytes=bb, vmem_limit=vmem_limit)
        outs.append(om.reshape(rows_main, d))

    if rows_main < rows:
        # Tiny remainder (< pack rows): keep the bulk lane-dense, handle the tail
        # with a small pack=1 call instead of padding the whole tensor.
        xt = xf[rows_main:]
        wt = weight.reshape(1, d)
        bt = None if bias is None else bias.reshape(1, d)
        ot = _layer_norm_2d(xt, wt, bt, d=d, pack=1,
                            block_bytes=bb, vmem_limit=vmem_limit)
        outs.append(ot)

    out = outs[0] if len(outs) == 1 else jnp.concatenate(outs, axis=0)
    return out.reshape(orig_shape)


# ---------------------------------------------------------------------------
# Reference + self-test
# ---------------------------------------------------------------------------

def _reference_layer_norm(x, weight, bias, eps=EPS):
    xf = x.astype(jnp.float32)
    mean = jnp.mean(xf, axis=-1, keepdims=True)
    var = jnp.mean((xf - mean) ** 2, axis=-1, keepdims=True)
    y = (xf - mean) * jax.lax.rsqrt(var + eps)
    y = y * weight.astype(jnp.float32)
    if bias is not None:
        y = y + bias.astype(jnp.float32)
    return y.astype(x.dtype)


if __name__ == "__main__":
    key = jax.random.PRNGKey(0)
    kx, kw, kb, k2, k3, k4 = jax.random.split(key, 6)

    # Shapes implied by the module's usage: (batch, seq, hidden), norm over hidden.
    batch, seq, hidden = 2, 16, 32
    x = jax.random.normal(kx, (batch, seq, hidden), dtype=jnp.float32)
    weight = 1.0 + 0.1 * jax.random.normal(kw, (hidden,), dtype=jnp.float32)
    bias = 0.1 * jax.random.normal(kb, (hidden,), dtype=jnp.float32)

    # Case 1: bias present, D=32 -> lane-dense packed path (4 rows per 128 lanes),
    # block-diagonal direct mean/var matmuls (2 MXU matmuls total).
    y = jax.block_until_ready(complex_layer_norm(x, weight, bias))
    y_ref = _reference_layer_norm(x, weight, bias)
    assert y.shape == x.shape
    assert jnp.allclose(y, y_ref, atol=2e-4, rtol=2e-4), "mismatch (bias, packed)"

    # Case 2: bias=None specialization (no zeros array, no extra DMA/add).
    y_nb = jax.block_until_ready(complex_layer_norm(x, weight, None))
    assert jnp.allclose(y_nb, _reference_layer_norm(x, weight, None),
                        atol=2e-4, rtol=2e-4), "mismatch (no bias, packed)"

    # Case 3: D multiple of 128 (pack=1) with a non-dividing row count
    # -> pl.cdiv grid + masked tail block + >=min-steps parallel grid.
    d3 = 256
    x3 = jax.random.normal(k2, (4, 5, d3), dtype=jnp.float32)
    w3 = 1.0 + 0.05 * jax.random.normal(kw, (d3,), dtype=jnp.float32)
    b3 = 0.05 * jax.random.normal(kb, (d3,), dtype=jnp.float32)
    y3 = jax.block_until_ready(complex_layer_norm(x3, w3, b3))
    assert jnp.allclose(y3, _reference_layer_norm(x3, w3, b3),
                        atol=2e-4, rtol=2e-4), "mismatch (tail / pack=1)"

    # Case 4: ragged row count for the packed path (rows % pack != 0)
    # -> lane-dense bulk call + tiny pack=1 remainder call.
    x4 = jax.random.normal(k3, (5, 13, hidden), dtype=jnp.float32)
    y4 = jax.block_until_ready(complex_layer_norm(x4, weight, bias))
    assert jnp.allclose(y4, _reference_layer_norm(x4, weight, bias),
                        atol=2e-4, rtol=2e-4), "mismatch (ragged packed)"

    # Case 5: bf16 inputs (16-row sublane alignment, f32 math inside the kernel).
    x5 = jax.random.normal(k4, (4, 8, 64), dtype=jnp.bfloat16)
    w5 = (1.0 + 0.1 * jax.random.normal(kw, (64,), dtype=jnp.float32)).astype(jnp.bfloat16)
    b5 = (0.1 * jax.random.normal(kb, (64,), dtype=jnp.float32)).astype(jnp.bfloat16)
    y5 = jax.block_until_ready(complex_layer_norm(x5, w5, b5))
    assert jnp.allclose(y5.astype(jnp.float32),
                        _reference_layer_norm(x5, w5, b5).astype(jnp.float32),
                        atol=2e-2, rtol=2e-2), "mismatch (bf16)"

    print("KERNEL_OK")
</pallas_src>

<mosaic_0001>
module attributes {stable_mosaic.version = 11 : i64} {
  func.func @_ln_kernel_bias(%arg0: i32, %arg1: memref<8x128xf32, #tpu.memory_space<vmem>>, %arg2: memref<1x128xf32, #tpu.memory_space<vmem>>, %arg3: memref<1x128xf32, #tpu.memory_space<vmem>>, %arg4: memref<8x128xf32, #tpu.memory_space<vmem>>) attributes {dimension_semantics = [#tpu.dimension_semantics<parallel>], iteration_bounds = array<i64: 1>, scalar_prefetch = 0 : i64, scratch_operands = 0 : i64, tpu.core_type = #tpu.core_type<tc>, window_params = [{transform_indices = @transform_0, window_bounds = array<i64: 8, 128>}, {pipeline_mode = #tpu.pipeline_mode<synchronous>, transform_indices = @transform_1, window_bounds = array<i64: 1, 128>}, {pipeline_mode = #tpu.pipeline_mode<synchronous>, transform_indices = @transform_2, window_bounds = array<i64: 1, 128>}, {transform_indices = @transform_3, window_bounds = array<i64: 8, 128>}]} {
    %c0 = arith.constant 0 : index
    %c0_0 = arith.constant 0 : index
    %0 = vector.load %arg1[%c0, %c0_0] : memref<8x128xf32, #tpu.memory_space<vmem>>, vector<8x128xf32>
    %1 = tpu.iota {dimensions = array<i32: 0>} : vector<128x128xi32>
    %2 = tpu.iota {dimensions = array<i32: 1>} : vector<128x128xi32>
    %c5_i32 = arith.constant 5 : i32
    %3 = vector.broadcast %c5_i32 : i32 to vector<128x128xi32>
    %4 = arith.shrsi %1, %3 : vector<128x128xi32>
    %c5_i32_1 = arith.constant 5 : i32
    %5 = vector.broadcast %c5_i32_1 : i32 to vector<128x128xi32>
    %6 = arith.shrsi %2, %5 : vector<128x128xi32>
    %7 = arith.cmpi eq, %4, %6 : vector<128x128xi32>
    %8 = arith.extui %7 : vector<128x128xi1> to vector<128x128xi32>
    %9 = arith.sitofp %8 : vector<128x128xi32> to vector<128x128xf32>
    %cst = arith.constant dense<0.000000e+00> : vector<8x128xf32>
    %10 = tpu.matmul %0, %9, %cst {dimension_numbers = #tpu.dot_dimension_numbers<[1], [0], [0], [1], [0, 0, 1, 1], [], []>, precision = #tpu.contract_precision<fp32>} : vector<8x128xf32>, vector<128x128xf32>, vector<8x128xf32> -> vector<8x128xf32>
    %cst_2 = arith.constant 3.125000e-02 : f32
    %11 = vector.broadcast %cst_2 : f32 to vector<8x128xf32>
    %12 = arith.mulf %10, %11 : vector<8x128xf32>
    %13 = arith.subf %0, %12 : vector<8x128xf32>
    %14 = arith.mulf %13, %13 : vector<8x128xf32>
    %cst_3 = arith.constant dense<0.000000e+00> : vector<8x128xf32>
    %15 = tpu.matmul %14, %9, %cst_3 {dimension_numbers = #tpu.dot_dimension_numbers<[1], [0], [0], [1], [0, 0, 1, 1], [], []>, precision = #tpu.contract_precision<fp32>} : vector<8x128xf32>, vector<128x128xf32>, vector<8x128xf32> -> vector<8x128xf32>
    %cst_4 = arith.constant 3.125000e-02 : f32
    %16 = vector.broadcast %cst_4 : f32 to vector<8x128xf32>
    %17 = arith.mulf %15, %16 : vector<8x128xf32>
    %cst_5 = arith.constant 9.99999974E-6 : f32
    %18 = vector.broadcast %cst_5 : f32 to vector<8x128xf32>
    %19 = arith.addf %17, %18 : vector<8x128xf32>
    %20 = math.rsqrt %19 : vector<8x128xf32>
    %21 = arith.mulf %13, %20 : vector<8x128xf32>
    %c0_6 = arith.constant 0 : index
    %c0_7 = arith.constant 0 : index
    %22 = vector.load %arg2[%c0_6, %c0_7] : memref<1x128xf32, #tpu.memory_space<vmem>>, vector<1x128xf32>
    %23 = vector.broadcast %22 : vector<1x128xf32> to vector<8x128xf32>
    %24 = arith.mulf %21, %23 : vector<8x128xf32>
    %c0_8 = arith.constant 0 : index
    %c0_9 = arith.constant 0 : index
    %25 = vector.load %arg3[%c0_8, %c0_9] : memref<1x128xf32, #tpu.memory_space<vmem>>, vector<1x128xf32>
    %26 = vector.broadcast %25 : vector<1x128xf32> to vector<8x128xf32>
    %27 = arith.addf %24, %26 : vector<8x128xf32>
    %c0_10 = arith.constant 0 : index
    %c0_11 = arith.constant 0 : index
    %28 = vector.load %arg4[%c0_10, %c0_11] : memref<8x128xf32, #tpu.memory_space<vmem>>, vector<8x128xf32>
    tpu.vector_store %arg4[%c0_10, %c0_11], %27 {strides = array<i32>} : memref<8x128xf32, #tpu.memory_space<vmem>>, vector<8x128xf32>,
    return
  }
  func.func @transform_0(%arg0: i32) -> (i32, i32) {
    %c0_i32 = arith.constant 0 : i32
    %c0_i32_0 = arith.constant 0 : i32
    return %arg0, %c0_i32 : i32, i32
  }
  func.func @transform_1(%arg0: i32) -> (i32, i32) {
    %c0_i32 = arith.constant 0 : i32
    %c0_i32_0 = arith.constant 0 : i32
    %c0_i32_1 = arith.constant 0 : i32
    return %c0_i32, %c0_i32_0 : i32, i32
  }
  func.func @transform_2(%arg0: i32) -> (i32, i32) {
    %c0_i32 = arith.constant 0 : i32
    %c0_i32_0 = arith.constant 0 : i32
    %c0_i32_1 = arith.constant 0 : i32
    return %c0_i32, %c0_i32_0 : i32, i32
  }
  func.func @transform_3(%arg0: i32) -> (i32, i32) {
    %c0_i32 = arith.constant 0 : i32
    %c0_i32_0 = arith.constant 0 : i32
    return %arg0, %c0_i32 : i32, i32
  }
}

</mosaic_0001>

<bundles_post_ra>
// kernel: complex_layer_norm.1
= control target key start
LH: loop header
LB: loop body
LE: loop exit
PB: predicated region body
PF: predicated region fallthrough
CT: control target
= control target key end

     0   :  { %v15_v0 = vlaneseq  ;;  %v3143_v1 = vmov 0.0   ;;  %vm3119_vm0 = vmmov 0   ;;  %v3121_v26 = vmov 1.0   ;;  %s3115_s0 = inlined_call_operand.vmem [shape: f32[8,128], index: 0, kind: input, shape index: {}]   ;;  %s3116_s1 = inlined_call_operand.vmem [shape: f32[1,128], index: 1, kind: input, shape index: {}]   ;;  %s3117_s2 = inlined_call_operand.vmem [shape: f32[1,128], index: 2, kind: input, shape index: {}]   ;;  %s3118_s3 = inlined_call_operand.vmem [shape: f32[8,128], index: 3, kind: output, shape index: {}]  }
   0x1   :  { %1727 = vmatprep.subr.mxu0 %v3143_v1  ;;  %1762 = vmatprep.subr.mxu1 %v3143_v1  ;;  %v2180_v2 = vld [vmem:[%s3115_s0] sm:$0xff]  ;;  %v3153_v27 = vmov 0  ;;  %v3157_v30 = vmov 0  ;;  %v3163_v57 = vmov 0 }
   0x2   :  { %3146 = vst [vmem:[#allocation2_spill] sm:$0xff] %v2180_v2  ;;  %v2182_v3 = vshrl.u32 %v15_v0, 7  ;;  %v33_v4 = vand.u32 127, %v15_v0  ;;  %1759 = vmatprep.mubr.msk.f32.mxu0 %vm3119_vm0, %v3143_v1  ;;  %1794 = vmatprep.mubr.msk.f32.mxu1 %vm3119_vm0, %v3143_v1  ;;  %v2189_v5 = vand.u32 4294901760, %v2180_v2 }
   0x4   :  { %v31_v6 = vadd.s32 120, %v2182_v3  ;;  %v2192_v7 = vshra.s32 %v33_v4, 5  ;;  %v30_v8 = vadd.s32 112, %v2182_v3  ;;  %v29_v9 = vadd.s32 104, %v2182_v3 }
   0x5   :  { %v28_v10 = vadd.s32 96, %v2182_v3  ;;  %v27_v11 = vadd.s32 88, %v2182_v3  ;;  %v26_v12 = vadd.s32 80, %v2182_v3  ;;  %v25_v13 = vadd.s32 72, %v2182_v3 }
   0x6   :  { %v49_v14 = vshra.s32 %v31_v6, 5  ;;  %v48_v15 = vshra.s32 %v30_v8, 5  ;;  %v47_v16 = vshra.s32 %v29_v9, 5  ;;  %v24_v17 = vadd.s32 64, %v2182_v3 }
   0x7   :  { %v46_v18 = vshra.s32 %v28_v10, 5  ;;  %v45_v19 = vshra.s32 %v27_v11, 5  ;;  %v44_v20 = vshra.s32 %v26_v12, 5  ;;  %v43_v21 = vshra.s32 %v25_v13, 5 }
   0x8   :  { %vm2202_vm1 = vcmp.eq.s32.totalorder %v49_v14, %v2192_v7  ;;  %vm2207_vm2 = vcmp.eq.s32.totalorder %v48_v15, %v2192_v7  ;;  %vm2212_vm3 = vcmp.eq.s32.totalorder %v47_v16, %v2192_v7  ;;  %v42_v25 = vshra.s32 %v24_v17, 5 }
   0x9   :  { %1728 = vmatpush3.msk.msra.mxu0 %vm2202_vm1, %v3121_v26  ;;  %vm2220_vm4 = vcmp.eq.s32.totalorder %v46_v18, %v2192_v7  ;;  %vm2225_vm5 = vcmp.eq.s32.totalorder %v45_v19, %v2192_v7  ;;  %v1424_v29 = vsel %vm2202_vm1, 1.0, %v3143_v1  ;;  %vm2233_vm6 = vcmp.eq.s32.totalorder %v44_v20, %v2192_v7 }
   0xa   :  { %v3154_v27 = vsel %vm2220_vm4, 4294967295, %v3153_v27  ;;  %v3158_v30 = vsel %vm2233_vm6, 4294967295, %v3157_v30  ;;  %1729 = vmatprep.subr.mxu0 %v3143_v1  ;;  %v2238_v31 = vsub.f32 %v1424_v29, %v1424_v29  ;;  %v1423_v32 = vsel %vm2207_vm2, 1.0, %v3143_v1 }
   0xb   :  { %vm2244_vm7 = vcmp.eq.s32.totalorder %v43_v21, %v2192_v7  ;;  %v1422_v34 = vsel %vm2212_vm3, 1.0, %v3143_v1  ;;  %1730 = vmatpush3.msk.msra.mxu0 %vm2207_vm2, %v3121_v26  ;;  %v2254_v35 = vsub.f32 %v1423_v32, %v1423_v32  ;;  %vm2259_vm8 = vcmp.eq.s32.totalorder %v42_v25, %v2192_v7  ;;  %v1522_v21 = vld [vmem:[%s3117_s2] ss:$0 sm:$0xff] }
   0xc   :  { %v2256_v36 = vsub.f32 %v1422_v34, %v1422_v34  ;;  %v1421_v38 = vsel %vm2220_vm4, 1.0, %v3143_v1  ;;  %1731 = vmatprep.subr.mxu0 %v3143_v1  ;;  %v2268_v39 = vand.u32 4294901760, %v2238_v31  ;;  %v23_v41 = vadd.s32 56, %v2182_v3 }
   0xd   :  { %v2270_v40 = vsub.f32 %v1421_v38, %v1421_v38  ;;  %v1420_v42 = vsel %vm2225_vm5, 1.0, %v3143_v1  ;;  %1732 = vmatpush3.msk.msra.mxu0 %vm2212_vm3, %v3121_v26  ;;  %v2280_v43 = vand.u32 4294901760, %v2254_v35  ;;  %v22_v46 = vadd.s32 48, %v2182_v3 }
   0xe   :  { %v2283_v44 = vand.u32 4294901760, %v2256_v36  ;;  %v2285_v45 = vsub.f32 %v1420_v42, %v1420_v42  ;;  %1733 = vmatprep.subr.mxu0 %v3143_v1  ;;  %v194_v47 = vsub.f32 %v2238_v31, %v2268_v39  ;;  %v41_v49 = vshra.s32 %v23_v41, 5 }
   0xf   :  { %v2292_v48 = vand.u32 4294901760, %v2270_v40  ;;  %v1419_v50 = vsel %vm2233_vm6, 1.0, %v3143_v1  ;;  %1734 = vmatpush3.msk.msra.mxu0 %vm2220_vm4, %v3121_v26  ;;  %v201_v51 = vsub.f32 %v2254_v35, %v2280_v43  ;;  %v40_v54 = vshra.s32 %v22_v46, 5 }
  0x10   :  { %v208_v52 = vsub.f32 %v2256_v36, %v2283_v44  ;;  %v2305_v53 = vand.u32 4294901760, %v2285_v45  ;;  %1735 = vmatprep.subr.mxu0 %v3143_v1  ;;  %v2308_v55 = vand.u32 4294901760, %v194_v47  ;;  %vm2313_vm9 = vcmp.eq.s32.totalorder %v41_v49, %v2192_v7 }
  0x11   :  { %v215_v56 = vsub.f32 %v2270_v40, %v2292_v48  ;;  %v3164_v57 = vsel %vm2313_vm9, 4294967295, %v3163_v57  ;;  %v2317_v58 = vsub.f32 %v1419_v50, %v1419_v50  ;;  %1736 = vmatpush3.msk.msra.mxu0 %vm2225_vm5, %v3121_v26  ;;  %v2322_v59 = vand.u32 4294901760, %v201_v51 }
  0x12   :  { %v2324_v60 = vand.u32 4294901760, %v208_v52  ;;  %v222_v61 = vsub.f32 %v2285_v45, %v2305_v53  ;;  %vm2329_vm10 = vcmp.eq.s32.totalorder %v40_v54, %v2192_v7  ;;  %1737 = vmatprep.subr.mxu0 %v3143_v1  ;;  %1763 = vmatpush3.msra.mxu1 %v2308_v55  ;;  %v21_v4 = vadd.s32 40, %v2182_v3 }
  0x13   :  { %v2335_v63 = vand.u32 4294901760, %v215_v56  ;;  %v2338_v0 = vand.u32 4294901760, %v2317_v58  ;;  %v1418_v6 = vsel %vm2244_vm7, 1.0, %v3143_v1  ;;  %1738 = vmatpush3.msk.msra.mxu0 %vm2233_vm6, %v3121_v26  ;;  %1764 = vmatprep.subr.mxu1 %v3143_v1  ;;  %v20_v10 = vadd.s32 32, %v2182_v3 }
  0x14   :  { %v2348_v8 = vand.u32 4294901760, %v222_v61  ;;  %v2350_v9 = vsub.f32 %v1418_v6, %v1418_v6  ;;  %v1417_v11 = vsel %vm2259_vm8, 1.0, %v3143_v1  ;;  %1739 = vmatprep.subr.mxu0 %v3143_v1  ;;  %1765 = vmatpush3.msra.mxu1 %v2322_v59  ;;  %v39_v13 = vshra.s32 %v21_v4, 5 }
  0x15   :  { %v229_v12 = vsub.f32 %v2317_v58, %v2338_v0  ;;  %v2360_v14 = vsub.f32 %v1417_v11, %v1417_v11  ;;  %v19_v15 = vadd.s32 24, %v2182_v3  ;;  %1740 = vmatpush3.msk.msra.mxu0 %vm2244_vm7, %v3121_v26  ;;  %1766 = vmatprep.subr.mxu1 %v3143_v1  ;;  %v38_v17 = vshra.s32 %v20_v10, 5 }
  0x16   :  { %3167 = vst [vmem:[#allocation3_spill] sm:$0xff] %v2348_v8  ;;  %v2368_v16 = vand.u32 4294901760, %v2350_v9  ;;  %v1416_v18 = vsel %vm2313_vm9, 1.0, %v3143_v1  ;;  %v18_v19 = vadd.s32 16, %v2182_v3  ;;  %1741 = vmatprep.subr.mxu0 %v3143_v1  ;;  %1767 = vmatpush3.msra.mxu1 %v2324_v60  ;;  %vm2379_vm11 = vcmp.eq.s32.totalorder %v39_v13, %v2192_v7 }
  0x17   :  { %v2376_v20 = vand.u32 4294901760, %v229_v12  ;;  %v2384_v25 = vand.u32 4294901760, %v2360_v14  ;;  %v37_v29 = vshra.s32 %v19_v15, 5  ;;  %1742 = vmatpush3.msk.msra.mxu0 %vm2259_vm8, %v3121_v26  ;;  %1768 = vmatprep.subr.mxu1 %v3143_v1  ;;  %vm2393_vm12 = vcmp.eq.s32.totalorder %v38_v17, %v2192_v7 }
  0x18   :  { %v236_v32 = vsub.f32 %v2350_v9, %v2368_v16  ;;  %v2397_v38 = vsub.f32 %v1416_v18, %v1416_v18  ;;  %v36_v41 = vshra.s32 %v18_v19, 5  ;;  %1743 = vmatprep.subr.mxu0 %v3143_v1  ;;  %1769 = vmatpush3.msra.mxu1 %v2335_v63  ;;  %v1415_v47 = vsel %vm2329_vm10, 1.0, %v3143_v1 }
  0x19   :  { %3168 = vst [vmem:[#allocation4_spill] sm:$0xff] %v2376_v20  ;;  %v243_v42 = vsub.f32 %v2360_v14, %v2384_v25  ;;  %vm2404_vm13 = vcmp.eq.s32.totalorder %v37_v29, %v2192_v7  ;;  %v17_v49 = vadd.s32 8, %v2182_v3  ;;  %1744 = vmatpush3.msk.msra.mxu0 %vm2313_vm9, %v3121_v26  ;;  %1770 = vmatprep.subr.mxu1 %v3143_v1  ;;  %v1414_v4 = vsel %vm2379_vm11, 1.0, %v3143_v1 }
  0x1a   :  { %v2416_v50 = vand.u32 4294901760, %v236_v32  ;;  %v2419_v51 = vand.u32 4294901760, %v2397_v38  ;;  %vm2422_vm14 = vcmp.eq.s32.totalorder %v36_v41, %v2192_v7  ;;  %v2426_v54 = vsub.f32 %v1415_v47, %v1415_v47  ;;  %1745 = vmatprep.subr.mxu0 %v3143_v1  ;;  %1771 = vmatpush3.msra.mxu1 %v2348_v8 }
  0x1b   :  { %v2430_v56 = vand.u32 4294901760, %v243_v42  ;;  %v35_v61 = vshra.s32 %v17_v49, 5  ;;  %v34_v6 = vshra.s32 %v2182_v3, 5  ;;  %1746 = vmatpush3.msk.msra.mxu0 %vm2329_vm10, %v3121_v26  ;;  %1772 = vmatprep.subr.mxu1 %v3143_v1  ;;  %v2445_v12 = vsub.f32 %v1414_v4, %v1414_v4 }
  0x1c   :  { %3175 = vst [vmem:[#allocation5_spill] sm:$0xff] %v2416_v50  ;;  %v250_v10 = vsub.f32 %v2397_v38, %v2419_v51  ;;  %v2443_v11 = vand.u32 4294901760, %v2426_v54  ;;  %v1413_v13 = vsel %vm2393_vm12, 1.0, %v3143_v1  ;;  %1747 = vmatprep.subr.mxu0 %v3143_v1  ;;  %1773 = vmatpush3.msra.mxu1 %v2376_v20  ;;  %v1412_v18 = vsel %vm2404_vm13, 1.0, %v3143_v1 }
  0x1d   :  { %3178 = vst [vmem:[#allocation6_spill] sm:$0xff] %v2430_v56  ;;  %vm2453_vm15 = vcmp.eq.s32.totalorder %v35_v61, %v2192_v7  ;;  %vm2458_vm0 = vcmp.eq.s32.totalorder %v34_v6, %v2192_v7  ;;  %v2462_v17 = vsub.f32 %v1413_v13, %v1413_v13  ;;  %1748 = vmatpush3.msk.msra.mxu0 %vm2379_vm11, %v3121_v26  ;;  %v2476_v29 = vand.u32 4294901760, %v2445_v12 }
  0x1e   :  { %1774 = vmatprep.subr.mxu1 %v3143_v1  ;;  %v2471_v19 = vand.u32 4294901760, %v250_v10  ;;  %v257_v7 = vsub.f32 %v2426_v54, %v2443_v11  ;;  %v2480_v32 = vsub.f32 %v2180_v2, %v2189_v5  ;;  %1749 = vmatprep.subr.mxu0 %v3143_v1  ;;  %v2487_v42 = vsub.f32 %v1412_v18, %v1412_v18 }
  0x1f   :  { %1775 = vmatpush3.msra.mxu1 %v2416_v50  ;;  %v2485_v41 = vand.u32 4294901760, %v2462_v17  ;;  %v1411_v47 = vsel %vm2422_vm14, 1.0, %v3143_v1  ;;  %v1410_v49 = vsel %vm2453_vm15, 1.0, %v3143_v1  ;;  %1750 = vmatpush3.msk.msra.mxu0 %vm2393_vm12, %v3121_v26  ;;  %v264_v4 = vsub.f32 %v2445_v12, %v2476_v29 }
  0x20   :  { %3183 = vst [vmem:[#allocation7_spill] sm:$0xff] %v2471_v19  ;;  %1776 = vmatprep.subr.mxu1 %v3143_v1  ;;  %v2499_v61 = vand.u32 4294901760, %v257_v7  ;;  %v3128_v6 = vand.u32 4294901760, %v2480_v32  ;;  %v2504_v10 = vsub.f32 %v1411_v47, %v1411_v47  ;;  %1751 = vmatprep.subr.mxu0 %v3143_v1  ;;  %v2511_v18 = vand.u32 4294901760, %v2487_v42 }
  0x21   :  { %3184 = vst [vmem:[#allocation8_spill] sm:$0xff] %v2485_v41  ;;  %1777 = vmatpush3.msra.mxu1 %v2430_v56  ;;  %v271_v13 = vsub.f32 %v2462_v17, %v2485_v41  ;;  %v2513_v26 = vsub.f32 %v1410_v49, %v1410_v49  ;;  %v1409_v7 = vsel %vm2458_vm0, 1.0, %v3143_v1  ;;  %v3187_v2 = vmov 1.0  }
  0x22   :  { %3185 = vst [vmem:[#allocation9_spill] sm:$0xff] %v2499_v61  ;;  %3186 = vst [vmem:[#allocation10_spill] sm:$0xff] %v2511_v18  ;;  %1752 = vmatpush3.msk.msra.mxu0 %vm2404_vm13, %v3187_v2  ;;  %1778 = vmatprep.subr.mxu1 %v3143_v1  ;;  %v183_v47 = vsub.f32 %v2480_v32, %v3128_v6  ;;  %v2526_v56 = vand.u32 4294901760, %v2504_v10  ;;  %v2528_v50 = vsub.f32 %v1409_v7, %v1409_v7 }
  0x23   :  { %1753 = vmatprep.subr.mxu0 %v3143_v1  ;;  %1779 = vmatpush3.msra.mxu1 %v2471_v19  ;;  %v2532_v49 = vand.u32 4294901760, %v264_v4  ;;  %v278_v20 = vsub.f32 %v2487_v42, %v2511_v18  ;;  %v2537_v8 = vand.u32 4294901760, %v2513_v26  ;;  %v2545_v7 = vand.u32 4294901760, %v271_v13 }
  0x24   :  { %3188 = vst [vmem:[#allocation11_spill] sm:$0xff] %v2526_v56  ;;  %1754 = vmatpush3.msk.msra.mxu0 %vm2422_vm14, %v3187_v2  ;;  %1780 = vmatprep.subr.mxu1 %v3143_v1  ;;  %v285_v4 = vsub.f32 %v2504_v10, %v2526_v56  ;;  %v2550_v6 = vand.u32 4294901760, %v2528_v50  ;;  %v184_v19 = vand.u32 4294901760, %v183_v47 }
  0x25   :  { %3189 = vst [vmem:[#allocation12_spill] sm:$0xff] %v2532_v49  ;;  %3190 = vst [vmem:[#allocation13_spill] sm:$0xff] %v2537_v8  ;;  %1755 = vmatprep.subr.mxu0 %v3143_v1  ;;  %1781 = vmatpush3.msra.mxu1 %v2499_v61  ;;  %v2558_v61 = vand.u32 4294901760, %v278_v20  ;;  %v292_v13 = vsub.f32 %v2513_v26, %v2537_v8 }
  0x26   :  { %3191 = vst [vmem:[#allocation14_spill] sm:$0xff] %v2550_v6  ;;  %1756 = vmatpush3.msk.msra.mxu0 %vm2453_vm15, %v3187_v2  ;;  %1782 = vmatprep.subr.mxu1 %v3143_v1  ;;  %v2568_v47 = vand.u32 4294901760, %v285_v4 }
  0x27   :  { %1757 = vmatprep.subr.mxu0 %v3143_v1  ;;  %1783 = vmatpush3.msra.mxu1 %v2532_v49  ;;  %v299_v49 = vsub.f32 %v2528_v50, %v2550_v6  ;;  %v2575_v20 = vand.u32 4294901760, %v292_v13 }
  0x28   :  { %1758 = vmatpush3.msk.msra.mxu0 %vm2458_vm0, %v3187_v2  ;;  %1784 = vmatprep.subr.mxu1 %v3143_v1  ;;  %v3207_v22 = vld [vmem:[#allocation8_spill] sm:$0xff] }
  0x29   :  { %1785 = vmatpush3.msra.mxu1 %v2545_v7  ;;  %1797 = vmatprep.subr.mxu0 %v3143_v1  ;;  %v2581_v4 = vand.u32 4294901760, %v299_v49  ;;  %v3208_v23 = vld [vmem:[#allocation10_spill] sm:$0xff] }
  0x2a   :  { %1760 = vmatmul.mubr.f32.vlgmr.msra.gmra.mxu0 %v184_v19  ;;  %1786 = vmatprep.subr.mxu1 %v3143_v1  ;;  %v3193_v19 = vand.u32 4294901760, %v2480_v32 }
  0x2b   :  { %1798 = vmatpush3.msra.mxu0 %v2238_v31  ;;  %1787 = vmatpush3.msra.mxu1 %v2558_v61  ;;  %v3209_v24 = vld [vmem:[#allocation11_spill] sm:$0xff] }
  0x2c   :  { %1799 = vmatprep.subr.mxu0 %v3143_v1  ;;  %1788 = vmatprep.subr.mxu1 %v3143_v1  ;;  %v3202_v49 = vld [vmem:[#allocation12_spill] sm:$0xff] }
  0x2d   :  { %1800 = vmatpush3.msra.mxu0 %v2254_v35  ;;  %1789 = vmatpush3.msra.mxu1 %v2568_v47 }
  0x2e   :  { %1801 = vmatprep.subr.mxu0 %v3143_v1  ;;  %1790 = vmatprep.subr.mxu1 %v3143_v1 }
  0x2f   :  { %1802 = vmatpush3.msra.mxu0 %v2256_v36  ;;  %1791 = vmatpush3.msra.mxu1 %v2575_v20 }
  0x30   :  { %1803 = vmatprep.subr.mxu0 %v3143_v1  ;;  %1792 = vmatprep.subr.mxu1 %v3143_v1 }
  0x31   :  { %1804 = vmatpush3.msra.mxu0 %v2270_v40  ;;  %1793 = vmatpush3.msra.mxu1 %v2581_v4 }
  0x32   :  { %1805 = vmatprep.subr.mxu0 %v3143_v1  ;;  %1795 = vmatmul.mubr.f32.vlgmr.msra.gmra.mxu1 %v2189_v5 }
  0x33   :  { %1806 = vmatpush3.msra.mxu0 %v2285_v45  ;;  %1832 = vmatprep.subr.mxu1 %v3143_v1 }
  0x34   :  { %1807 = vmatprep.subr.mxu0 %v3143_v1  ;;  %1833 = vmatpush3.msk.msra.mxu1 %vm2202_vm1, %v3187_v2 }
  0x35   :  { %1808 = vmatpush3.msra.mxu0 %v2317_v58  ;;  %1834 = vmatprep.subr.mxu1 %v3143_v1 }
  0x36   :  { %1809 = vmatprep.subr.mxu0 %v3143_v1  ;;  %1835 = vmatpush3.msk.msra.mxu1 %vm2207_vm2, %v3187_v2 }
  0x37   :  { %1810 = vmatpush3.msra.mxu0 %v2350_v9  ;;  %1836 = vmatprep.subr.mxu1 %v3143_v1 }
  0x38   :  { %1811 = vmatprep.subr.mxu0 %v3143_v1  ;;  %1837 = vmatpush3.msk.msra.mxu1 %vm2212_vm3, %v3187_v2 }
  0x39   :  { %1812 = vmatpush3.msra.mxu0 %v2360_v14  ;;  %1838 = vmatprep.subr.mxu1 %v3143_v1 }
  0x3a   :  { %1813 = vmatprep.subr.mxu0 %v3143_v1  ;;  %1839 = vmatpush3.msk.msra.mxu1 %vm2220_vm4, %v3187_v2 }
  0x3b   :  { %1814 = vmatpush3.msra.mxu0 %v2397_v38  ;;  %1840 = vmatprep.subr.mxu1 %v3143_v1 }
  0x3c   :  { %1815 = vmatprep.subr.mxu0 %v3143_v1  ;;  %1841 = vmatpush3.msk.msra.mxu1 %vm2225_vm5, %v3187_v2 }
  0x3d   :  { %1816 = vmatpush3.msra.mxu0 %v2426_v54  ;;  %1842 = vmatprep.subr.mxu1 %v3143_v1 }
  0x3e   :  { %1817 = vmatprep.subr.mxu0 %v3143_v1  ;;  %1843 = vmatpush3.msk.msra.mxu1 %vm2233_vm6, %v3187_v2 }
  0x3f   :  { %1818 = vmatpush3.msra.mxu0 %v2445_v12  ;;  %1844 = vmatprep.subr.mxu1 %v3143_v1 }
  0x40   :  { %1819 = vmatprep.subr.mxu0 %v3143_v1  ;;  %1845 = vmatpush3.msk.msra.mxu1 %vm2244_vm7, %v3187_v2 }
  0x41   :  { %1820 = vmatpush3.msra.mxu0 %v2462_v17  ;;  %1846 = vmatprep.subr.mxu1 %v3143_v1 }
  0x42   :  { %1821 = vmatprep.subr.mxu0 %v3143_v1  ;;  %1847 = vmatpush3.msk.msra.mxu1 %vm2259_vm8, %v3187_v2 }
  0x43   :  { %1822 = vmatpush3.msra.mxu0 %v2487_v42  ;;  %1848 = vmatprep.subr.mxu1 %v3143_v1 }
  0x44   :  { %1823 = vmatprep.subr.mxu0 %v3143_v1  ;;  %1849 = vmatpush3.msk.msra.mxu1 %vm2313_vm9, %v3187_v2  ;;  %vm3192_vm9 = vmmov 0  }
  0x45   :  { %1824 = vmatpush3.msra.mxu0 %v2504_v10  ;;  %1850 = vmatprep.subr.mxu1 %v3143_v1 }
  0x46   :  { %1825 = vmatprep.subr.mxu0 %v3143_v1  ;;  %1851 = vmatpush3.msk.msra.mxu1 %vm2329_vm10, %v3187_v2 }
  0x47   :  { %1826 = vmatpush3.msra.mxu0 %v2513_v26  ;;  %1852 = vmatprep.subr.mxu1 %v3143_v1 }
  0x48   :  { %1827 = vmatprep.subr.mxu0 %v3143_v1  ;;  %1853 = vmatpush3.msk.msra.mxu1 %vm2379_vm11, %v3187_v2 }
  0x49   :  { %1828 = vmatpush3.msra.mxu0 %v2528_v50  ;;  %1829 = vmatprep.mubr.msk.f32.mxu0 %vm3192_vm9, %v3143_v1 }
  0x4a   :  { %1854 = vmatprep.subr.mxu1 %v3143_v1  ;;  %1830 = vmatmul.mubr.f32.vlgmr.msra.gmra.mxu0 %v2480_v32  ;;  %v3201_v32 = vld [vmem:[#allocation9_spill] sm:$0xff] }
  0x4b   :  { %1855 = vmatpush3.msk.msra.mxu1 %vm2393_vm12, %v3187_v2  ;;  %1867 = vmatprep.subr.mxu0 %v3143_v1 }
  0x4c   :  { %1856 = vmatprep.subr.mxu1 %v3143_v1  ;;  %1868 = vmatpush3.msra.mxu0 %v2268_v39 }
  0x4d   :  { %1857 = vmatpush3.msk.msra.mxu1 %vm2404_vm13, %v3187_v2  ;;  %1869 = vmatprep.subr.mxu0 %v3143_v1 }
  0x4e   :  { %1858 = vmatprep.subr.mxu1 %v3143_v1  ;;  %1870 = vmatpush3.msra.mxu0 %v2280_v43 }
  0x4f   :  { %1859 = vmatpush3.msk.msra.mxu1 %vm2422_vm14, %v3187_v2  ;;  %1871 = vmatprep.subr.mxu0 %v3143_v1 }
  0x50   :  { %1860 = vmatprep.subr.mxu1 %v3143_v1  ;;  %1872 = vmatpush3.msra.mxu0 %v2283_v44 }
  0x51   :  { %1861 = vmatpush3.msk.msra.mxu1 %vm2453_vm15, %v3187_v2  ;;  %1873 = vmatprep.subr.mxu0 %v3143_v1 }
  0x52   :  { %1862 = vmatprep.subr.mxu1 %v3143_v1  ;;  %1874 = vmatpush3.msra.mxu0 %v2292_v48 }
  0x53   :  { %1863 = vmatpush3.msk.msra.mxu1 %vm2458_vm0, %v3187_v2  ;;  %1864 = vmatprep.mubr.msk.f32.mxu1 %vm3192_vm9, %v3143_v1 }
  0x54   :  { %1875 = vmatprep.subr.mxu0 %v3143_v1  ;;  %1865 = vmatmul.mubr.f32.vlgmr.msra.gmra.mxu1 %v3193_v19 }
  0x55   :  { %1876 = vmatpush3.msra.mxu0 %v2305_v53  ;;  %1902 = vmatprep.subr.mxu1 %v3143_v1 }
  0x56   :  { %1877 = vmatprep.subr.mxu0 %v3143_v1  ;;  %1903 = vmatpush3.msk.msra.mxu1 %vm2202_vm1, %v3187_v2 }
  0x57   :  { %1878 = vmatpush3.msra.mxu0 %v2338_v0  ;;  %1904 = vmatprep.subr.mxu1 %v3143_v1 }
  0x58   :  { %1879 = vmatprep.subr.mxu0 %v3143_v1  ;;  %1905 = vmatpush3.msk.msra.mxu1 %vm2207_vm2, %v3187_v2 }
  0x59   :  { %1880 = vmatpush3.msra.mxu0 %v2368_v16  ;;  %1906 = vmatprep.subr.mxu1 %v3143_v1 }
  0x5a   :  { %1881 = vmatprep.subr.mxu0 %v3143_v1  ;;  %1907 = vmatpush3.msk.msra.mxu1 %vm2212_vm3, %v3187_v2 }
  0x5b   :  { %1882 = vmatpush3.msra.mxu0 %v2384_v25  ;;  %1908 = vmatprep.subr.mxu1 %v3143_v1 }
  0x5c   :  { %1883 = vmatprep.subr.mxu0 %v3143_v1  ;;  %1909 = vmatpush3.msk.msra.mxu1 %vm2220_vm4, %v3187_v2 }
  0x5d   :  { %1884 = vmatpush3.msra.mxu0 %v2419_v51  ;;  %1910 = vmatprep.subr.mxu1 %v3143_v1 }
  0x5e   :  { %1885 = vmatprep.subr.mxu0 %v3143_v1  ;;  %1911 = vmatpush3.msk.msra.mxu1 %vm2225_vm5, %v3187_v2 }
  0x5f   :  { %1886 = vmatpush3.msra.mxu0 %v2443_v11  ;;  %1912 = vmatprep.subr.mxu1 %v3143_v1 }
  0x60   :  { %1887 = vmatprep.subr.mxu0 %v3143_v1  ;;  %1913 = vmatpush3.msk.msra.mxu1 %vm2233_vm6, %v3187_v2  ;;  %vm3194_vm6 = vnez %v3164_v57 }
  0x61   :  { %1888 = vmatpush3.msra.mxu0 %v2476_v29  ;;  %1914 = vmatprep.subr.mxu1 %v3143_v1 }
  0x62   :  { %1889 = vmatprep.subr.mxu0 %v3143_v1  ;;  %1915 = vmatpush3.msk.msra.mxu1 %vm2244_vm7, %v3187_v2 }
  0x63   :  { %1890 = vmatpush3.msra.mxu0 %v2485_v41  ;;  %1916 = vmatprep.subr.mxu1 %v3143_v1  ;;  %v3203_v41 = vld [vmem:[#allocation2_spill] sm:$0xff] }
  0x64   :  { %1891 = vmatprep.subr.mxu0 %v3143_v1  ;;  %1917 = vmatpush3.msk.msra.mxu1 %vm2259_vm8, %v3187_v2 }
  0x65   :  { %1892 = vmatpush3.msra.mxu0 %v2511_v18  ;;  %1918 = vmatprep.subr.mxu1 %v3143_v1 }
  0x66   :  { %1893 = vmatprep.subr.mxu0 %v3143_v1  ;;  %1919 = vmatpush3.msk.msra.mxu1 %vm3194_vm6, %v3187_v2 }
  0x67   :  { %1894 = vmatpush3.msra.mxu0 %v2526_v56  ;;  %1920 = vmatprep.subr.mxu1 %v3143_v1 }
  0x68   :  { %1895 = vmatprep.subr.mxu0 %v3143_v1  ;;  %1921 = vmatpush3.msk.msra.mxu1 %vm2329_vm10, %v3187_v2 }
  0x69   :  { %1896 = vmatpush3.msra.mxu0 %v2537_v8  ;;  %1922 = vmatprep.subr.mxu1 %v3143_v1 }
  0x6a   :  { %1897 = vmatprep.subr.mxu0 %v3143_v1  ;;  %1923 = vmatpush3.msk.msra.mxu1 %vm2379_vm11, %v3187_v2 }
  0x6b   :  { %1898 = vmatpush3.msra.mxu0 %v2550_v6  ;;  %1899 = vmatprep.mubr.msk.f32.mxu0 %vm3192_vm9, %v3143_v1 }
  0x6c   :  { %1924 = vmatprep.subr.mxu1 %v3143_v1  ;;  %1900 = vmatmul.mubr.f32.vlgmr.msra.gmra.mxu0 %v2189_v5 }
  0x6d   :  { %1925 = vmatpush3.msk.msra.mxu1 %vm2393_vm12, %v3187_v2  ;;  %1934 = vmatprep.mubr.msk.f32.mxu1 %vm3192_vm9, %v3143_v1 }
  0x6e   :  { %1926 = vmatprep.subr.mxu1 %v3143_v1  ;;  %1937 = vmatprep.subr.mxu0 %v3143_v1 }
  0x6f   :  { %1927 = vmatpush3.msk.msra.mxu1 %vm2404_vm13, %v3187_v2  ;;  %1938 = vmatpush3.msk.msra.mxu0 %vm2202_vm1, %v3187_v2 }
  0x70   :  { %1928 = vmatprep.subr.mxu1 %v3143_v1  ;;  %1939 = vmatprep.subr.mxu0 %v3143_v1 }
  0x71   :  { %1929 = vmatpush3.msk.msra.mxu1 %vm2422_vm14, %v3187_v2  ;;  %1940 = vmatpush3.msk.msra.mxu0 %vm2207_vm2, %v3187_v2 }
  0x72   :  { %1930 = vmatprep.subr.mxu1 %v3143_v1  ;;  %1941 = vmatprep.subr.mxu0 %v3143_v1 }
  0x73   :  { %1931 = vmatpush3.msk.msra.mxu1 %vm2453_vm15, %v3187_v2  ;;  %1942 = vmatpush3.msk.msra.mxu0 %vm2212_vm3, %v3187_v2 }
  0x74   :  { %1932 = vmatprep.subr.mxu1 %v3143_v1  ;;  %1943 = vmatprep.subr.mxu0 %v3143_v1 }
  0x75   :  { %1933 = vmatpush3.msk.msra.mxu1 %vm2458_vm0, %v3187_v2  ;;  %1944 = vmatpush3.msk.msra.mxu0 %vm2220_vm4, %v3187_v2  ;;  %vm3195_vm4 = vnez %v3158_v30 }
  0x76   :  { %1935 = vmatmul.mubr.f32.vlgmr.msra.gmra.mxu1 %v2189_v5  ;;  %1972 = vmatprep.subr.mxu1 %v3143_v1  ;;  %v3196_v5 = vld [vmem:[#allocation3_spill] sm:$0xff] }
  0x77   :  { %1973 = vmatpush3.msra.mxu1 %v2308_v55  ;;  %1945 = vmatprep.subr.mxu0 %v3143_v1  ;;  %v3197_v55 = vld [vmem:[#allocation4_spill] sm:$0xff] }
  0x78   :  { %1974 = vmatprep.subr.mxu1 %v3143_v1  ;;  %1946 = vmatpush3.msk.msra.mxu0 %vm2225_vm5, %v3187_v2 }
  0x79   :  { %1975 = vmatpush3.msra.mxu1 %v2322_v59  ;;  %1947 = vmatprep.subr.mxu0 %v3143_v1  ;;  %v3198_v59 = vld [vmem:[#allocation5_spill] sm:$0xff] }
  0x7a   :  { %1976 = vmatprep.subr.mxu1 %v3143_v1  ;;  %1948 = vmatpush3.msk.msra.mxu0 %vm3195_vm4, %v3187_v2 }
  0x7b   :  { %1977 = vmatpush3.msra.mxu1 %v2324_v60  ;;  %1949 = vmatprep.subr.mxu0 %v3143_v1  ;;  %v3199_v60 = vld [vmem:[#allocation6_spill] sm:$0xff] }
  0x7c   :  { %1978 = vmatprep.subr.mxu1 %v3143_v1  ;;  %1950 = vmatpush3.msk.msra.mxu0 %vm2244_vm7, %v3187_v2 }
  0x7d   :  { %1979 = vmatpush3.msra.mxu1 %v2335_v63  ;;  %1951 = vmatprep.subr.mxu0 %v3143_v1  ;;  %v3200_v63 = vld [vmem:[#allocation7_spill] sm:$0xff] }
  0x7e   :  { %1980 = vmatprep.subr.mxu1 %v3143_v1  ;;  %1952 = vmatpush3.msk.msra.mxu0 %vm2259_vm8, %v3187_v2 }
  0x7f   :  { %1981 = vmatpush3.msra.mxu1 %v3196_v5  ;;  %1953 = vmatprep.subr.mxu0 %v3143_v1 }
  0x80   :  { %1982 = vmatprep.subr.mxu1 %v3143_v1  ;;  %1954 = vmatpush3.msk.msra.mxu0 %vm3194_vm6, %v3187_v2 }
  0x81   :  { %1983 = vmatpush3.msra.mxu1 %v3197_v55  ;;  %1955 = vmatprep.subr.mxu0 %v3143_v1 }
  0x82   :  { %1984 = vmatprep.subr.mxu1 %v3143_v1  ;;  %1956 = vmatpush3.msk.msra.mxu0 %vm2329_vm10, %v3187_v2 }
  0x83   :  { %1985 = vmatpush3.msra.mxu1 %v3198_v59  ;;  %1957 = vmatprep.subr.mxu0 %v3143_v1 }
  0x84   :  { %1986 = vmatprep.subr.mxu1 %v3143_v1  ;;  %1958 = vmatpush3.msk.msra.mxu0 %vm2379_vm11, %v3187_v2 }
  0x85   :  { %1987 = vmatpush3.msra.mxu1 %v3199_v60  ;;  %1959 = vmatprep.subr.mxu0 %v3143_v1 }
  0x86   :  { %1988 = vmatprep.subr.mxu1 %v3143_v1  ;;  %1960 = vmatpush3.msk.msra.mxu0 %vm2393_vm12, %v3187_v2 }
  0x87   :  { %1989 = vmatpush3.msra.mxu1 %v3200_v63  ;;  %1961 = vmatprep.subr.mxu0 %v3143_v1 }
  0x88   :  { %1990 = vmatprep.subr.mxu1 %v3143_v1  ;;  %2004 = vmatprep.mubr.msk.f32.mxu1 %vm3192_vm9, %v3143_v1 }
  0x89   :  { %1991 = vmatpush3.msra.mxu1 %v3201_v32  ;;  %1962 = vmatpush3.msk.msra.mxu0 %vm2404_vm13, %v3187_v2 }
  0x8a   :  { %1992 = vmatprep.subr.mxu1 %v3143_v1  ;;  %1963 = vmatprep.subr.mxu0 %v3143_v1 }
  0x8b   :  { %1993 = vmatpush3.msra.mxu1 %v3202_v49  ;;  %1964 = vmatpush3.msk.msra.mxu0 %vm2422_vm14, %v3187_v2 }
  0x8c   :  { %1994 = vmatprep.subr.mxu1 %v3143_v1  ;;  %1965 = vmatprep.subr.mxu0 %v3143_v1 }
  0x8d   :  { %1995 = vmatpush3.msra.mxu1 %v2545_v7  ;;  %1966 = vmatpush3.msk.msra.mxu0 %vm2453_vm15, %v3187_v2 }
  0x8e   :  { %1996 = vmatprep.subr.mxu1 %v3143_v1  ;;  %1967 = vmatprep.subr.mxu0 %v3143_v1 }
  0x8f   :  { %1997 = vmatpush3.msra.mxu1 %v2558_v61  ;;  %1968 = vmatpush3.msk.msra.mxu0 %vm2458_vm0, %v3187_v2 }
  0x90   :  { %1998 = vmatprep.subr.mxu1 %v3143_v1  ;;  %1969 = vmatprep.mubr.msk.f32.mxu0 %vm3192_vm9, %v3143_v1 }
  0x91   :  { %1999 = vmatpush3.msra.mxu1 %v2568_v47  ;;  %2007 = vmatprep.subr.mxu0 %v3143_v1 }
  0x92   :  { %2000 = vmatprep.subr.mxu1 %v3143_v1 }
  0x93   :  { %2001 = vmatpush3.msra.mxu1 %v2575_v20 }
  0x94   :  { %2002 = vmatprep.subr.mxu1 %v3143_v1 }
  0x95   :  { %2003 = vmatpush3.msra.mxu1 %v2581_v4 }
  0x96   :  { %2042 = vmatprep.subr.mxu1 %v3143_v1 }
  0xea   :  { %v186_v61 = vpop.f32.mrf.mxu0 }
  0xec   :  { %v1761_v7 = vpop.f32.mrf.mxu0 }
  0xf2   :  { %v337_v13 = vpop.f32.mrf.mxu1 }
  0xf3   :  { %v338_v32 = vadd.f32 %v337_v13, %v186_v61 }
  0xf4   :  { %v1796_v19 = vpop.f32.mrf.mxu1 }
 0x10a   :  { %v441_v5 = vpop.f32.mrf.mxu0 }
 0x10b   :  { %v442_v49 = vadd.f32 %v441_v5, %v338_v32 }
 0x10c   :  { %v1831_v55 = vpop.f32.mrf.mxu0 }
 0x114   :  { %v530_v59 = vpop.f32.mrf.mxu1 }
 0x115   :  { %v531_v6 = vadd.f32 %v530_v59, %v442_v49 }
 0x116   :  { %v1866_v47 = vpop.f32.mrf.mxu1 }
 0x12c   :  { %v649_v60 = vpop.f32.mrf.mxu0 }
 0x12d   :  { %v650_v20 = vadd.f32 %v649_v60, %v531_v6 }
 0x12e   :  { %v1901_v63 = vpop.f32.mrf.mxu0 }
 0x136   :  { %v736_v8 = vpop.f32.mrf.mxu1 }
 0x137   :  { %v737_v56 = vadd.f32 %v736_v8, %v650_v20  ;;  %v3204_v8 = vmov 0.0  }
 0x138   :  { %v1936_v18 = vpop.f32.mrf.mxu1 }
 0x139   :  { %v740_v4 = vmul.f32 0.03125, %v737_v56 }
 0x13b   :  { %v2892_v1 = vsub.f32 %v3203_v41, %v740_v4 }
 0x13d   :  { %v742_v7 = vmul.f32 %v2892_v1, %v2892_v1 }
 0x13f   :  { %v2896_v19 = vand.u32 4294901760, %v742_v7 }
 0x141   :  { %v2899_v55 = vsub.f32 %v742_v7, %v2896_v19  ;;  %2005 = vmatmul.mubr.f32.vlgmr.msra.gmra.mxu1 %v2896_v19 }
 0x142   :  { %2043 = vmatpush3.msk.msra.mxu1 %vm2202_vm1, %v3187_v2  ;;  %2074 = vmatprep.mubr.msk.f32.mxu1 %vm3192_vm9, %v3204_v8  ;;  %vm3205_vm9 = vnez %v3154_v27 }
 0x143   :  { %2044 = vmatprep.subr.mxu1 %v3204_v8  ;;  %v826_v56 = vand.u32 4294901760, %v2899_v55 }
 0x144   :  { %2045 = vmatpush3.msk.msra.mxu1 %vm2207_vm2, %v3187_v2 }
 0x145   :  { %2046 = vmatprep.subr.mxu1 %v3204_v8  ;;  %v827_v41 = vsub.f32 %v2899_v55, %v826_v56 }
 0x146   :  { %2047 = vmatpush3.msk.msra.mxu1 %vm2212_vm3, %v3187_v2 }
 0x147   :  { %2048 = vmatprep.subr.mxu1 %v3204_v8  ;;  %v828_v6 = vand.u32 4294901760, %v827_v41 }
 0x148   :  { %2049 = vmatpush3.msk.msra.mxu1 %vm3205_vm9, %v3187_v2 }
 0x149   :  { %2050 = vmatprep.subr.mxu1 %v3204_v8  ;;  %1970 = vmatmul.mubr.f32.vlgmr.msra.gmra.mxu0 %v828_v6 }
 0x14a   :  { %2008 = vmatpush3.msra.mxu0 %v2238_v31  ;;  %2051 = vmatpush3.msk.msra.mxu1 %vm2225_vm5, %v3187_v2 }
 0x14b   :  { %2009 = vmatprep.subr.mxu0 %v3204_v8  ;;  %2052 = vmatprep.subr.mxu1 %v3204_v8 }
 0x14c   :  { %2010 = vmatpush3.msra.mxu0 %v2254_v35  ;;  %2053 = vmatpush3.msk.msra.mxu1 %vm3195_vm4, %v3187_v2 }
 0x14d   :  { %2011 = vmatprep.subr.mxu0 %v3204_v8  ;;  %2054 = vmatprep.subr.mxu1 %v3204_v8 }
 0x14e   :  { %2012 = vmatpush3.msra.mxu0 %v2256_v36  ;;  %2055 = vmatpush3.msk.msra.mxu1 %vm2244_vm7, %v3187_v2 }
 0x14f   :  { %2013 = vmatprep.subr.mxu0 %v3204_v8  ;;  %2056 = vmatprep.subr.mxu1 %v3204_v8 }
 0x150   :  { %2014 = vmatpush3.msra.mxu0 %v2270_v40  ;;  %2057 = vmatpush3.msk.msra.mxu1 %vm2259_vm8, %v3187_v2 }
 0x151   :  { %2015 = vmatprep.subr.mxu0 %v3204_v8  ;;  %2058 = vmatprep.subr.mxu1 %v3204_v8 }
 0x152   :  { %2016 = vmatpush3.msra.mxu0 %v2285_v45  ;;  %2059 = vmatpush3.msk.msra.mxu1 %vm3194_vm6, %v3187_v2 }
 0x153   :  { %2017 = vmatprep.subr.mxu0 %v3204_v8  ;;  %2060 = vmatprep.subr.mxu1 %v3204_v8 }
 0x154   :  { %2018 = vmatpush3.msra.mxu0 %v2317_v58  ;;  %2061 = vmatpush3.msk.msra.mxu1 %vm2329_vm10, %v3187_v2 }
 0x155   :  { %2019 = vmatprep.subr.mxu0 %v3204_v8  ;;  %2062 = vmatprep.subr.mxu1 %v3204_v8 }
 0x156   :  { %2020 = vmatpush3.msra.mxu0 %v2350_v9  ;;  %2063 = vmatpush3.msk.msra.mxu1 %vm2379_vm11, %v3187_v2 }
 0x157   :  { %2021 = vmatprep.subr.mxu0 %v3204_v8  ;;  %2064 = vmatprep.subr.mxu1 %v3204_v8 }
 0x158   :  { %2022 = vmatpush3.msra.mxu0 %v2360_v14  ;;  %2065 = vmatpush3.msk.msra.mxu1 %vm2393_vm12, %v3187_v2  ;;  %v1521_v14 = vld [vmem:[%s3116_s1] ss:$0 sm:$0xff] }
 0x159   :  { %2023 = vmatprep.subr.mxu0 %v3204_v8  ;;  %2066 = vmatprep.subr.mxu1 %v3204_v8 }
 0x15a   :  { %2024 = vmatpush3.msra.mxu0 %v2397_v38  ;;  %2067 = vmatpush3.msk.msra.mxu1 %vm2404_vm13, %v3187_v2 }
 0x15b   :  { %2025 = vmatprep.subr.mxu0 %v3204_v8  ;;  %2068 = vmatprep.subr.mxu1 %v3204_v8 }
 0x15c   :  { %2026 = vmatpush3.msra.mxu0 %v2426_v54  ;;  %2069 = vmatpush3.msk.msra.mxu1 %vm2422_vm14, %v3187_v2 }
 0x15d   :  { %2027 = vmatprep.subr.mxu0 %v3204_v8  ;;  %2070 = vmatprep.subr.mxu1 %v3204_v8 }
 0x15e   :  { %2028 = vmatpush3.msra.mxu0 %v2445_v12  ;;  %2071 = vmatpush3.msk.msra.mxu1 %vm2453_vm15, %v3187_v2 }
 0x15f   :  { %2029 = vmatprep.subr.mxu0 %v3204_v8  ;;  %2072 = vmatprep.subr.mxu1 %v3204_v8 }
 0x160   :  { %2030 = vmatpush3.msra.mxu0 %v2462_v17  ;;  %2073 = vmatpush3.msk.msra.mxu1 %vm2458_vm0, %v3187_v2 }
 0x161   :  { %2031 = vmatprep.subr.mxu0 %v3204_v8  ;;  %2075 = vmatmul.mubr.f32.vlgmr.msra.gmra.mxu1 %v826_v56 }
 0x162   :  { %2112 = vmatprep.subr.mxu1 %v3204_v8  ;;  %2032 = vmatpush3.msra.mxu0 %v2487_v42 }
 0x163   :  { %2113 = vmatpush3.msk.msra.mxu1 %vm2202_vm1, %v3187_v2  ;;  %2033 = vmatprep.subr.mxu0 %v3204_v8  ;;  %vm3206_vm1 = vmmov 0  }
 0x164   :  { %2114 = vmatprep.subr.mxu1 %v3204_v8  ;;  %2034 = vmatpush3.msra.mxu0 %v2504_v10 }
 0x165   :  { %2115 = vmatpush3.msk.msra.mxu1 %vm2207_vm2, %v3187_v2  ;;  %2035 = vmatprep.subr.mxu0 %v3204_v8 }
 0x166   :  { %2116 = vmatprep.subr.mxu1 %v3204_v8  ;;  %2036 = vmatpush3.msra.mxu0 %v2513_v26  ;;  %v3210_v26 = vld [vmem:[#allocation13_spill] sm:$0xff] }
 0x167   :  { %2117 = vmatpush3.msk.msra.mxu1 %vm2212_vm3, %v3187_v2  ;;  %2037 = vmatprep.subr.mxu0 %v3204_v8 }
 0x168   :  { %2118 = vmatprep.subr.mxu1 %v3204_v8  ;;  %2038 = vmatpush3.msra.mxu0 %v2528_v50 }
 0x169   :  { %2039 = vmatprep.mubr.msk.f32.mxu0 %vm3206_vm1, %v3204_v8  ;;  %2119 = vmatpush3.msk.msra.mxu1 %vm3205_vm9, %v3187_v2 }
 0x16a   :  { %2040 = vmatmul.mubr.f32.vlgmr.msra.gmra.mxu0 %v2899_v55  ;;  %2077 = vmatprep.subr.mxu0 %v3204_v8 }
 0x16b   :  { %2120 = vmatprep.subr.mxu1 %v3204_v8  ;;  %2078 = vmatpush3.msra.mxu0 %v2268_v39 }
 0x16c   :  { %2121 = vmatpush3.msk.msra.mxu1 %vm2225_vm5, %v3187_v2  ;;  %2079 = vmatprep.subr.mxu0 %v3204_v8 }
 0x16d   :  { %2122 = vmatprep.subr.mxu1 %v3204_v8  ;;  %2080 = vmatpush3.msra.mxu0 %v2280_v43 }
 0x16e   :  { %2123 = vmatpush3.msk.msra.mxu1 %vm3195_vm4, %v3187_v2  ;;  %2081 = vmatprep.subr.mxu0 %v3204_v8 }
 0x16f   :  { %2124 = vmatprep.subr.mxu1 %v3204_v8  ;;  %2082 = vmatpush3.msra.mxu0 %v2283_v44 }
 0x170   :  { %2125 = vmatpush3.msk.msra.mxu1 %vm2244_vm7, %v3187_v2  ;;  %2083 = vmatprep.subr.mxu0 %v3204_v8 }
 0x171   :  { %2126 = vmatprep.subr.mxu1 %v3204_v8  ;;  %2084 = vmatpush3.msra.mxu0 %v2292_v48 }
 0x172   :  { %2127 = vmatpush3.msk.msra.mxu1 %vm2259_vm8, %v3187_v2  ;;  %2085 = vmatprep.subr.mxu0 %v3204_v8 }
 0x173   :  { %2128 = vmatprep.subr.mxu1 %v3204_v8  ;;  %2086 = vmatpush3.msra.mxu0 %v2305_v53 }
 0x174   :  { %2129 = vmatpush3.msk.msra.mxu1 %vm3194_vm6, %v3187_v2  ;;  %2087 = vmatprep.subr.mxu0 %v3204_v8 }
 0x175   :  { %2130 = vmatprep.subr.mxu1 %v3204_v8  ;;  %2088 = vmatpush3.msra.mxu0 %v2338_v0 }
 0x176   :  { %2131 = vmatpush3.msk.msra.mxu1 %vm2329_vm10, %v3187_v2  ;;  %2089 = vmatprep.subr.mxu0 %v3204_v8 }
 0x177   :  { %2132 = vmatprep.subr.mxu1 %v3204_v8  ;;  %2090 = vmatpush3.msra.mxu0 %v2368_v16 }
 0x178   :  { %2133 = vmatpush3.msk.msra.mxu1 %vm2379_vm11, %v3187_v2  ;;  %2091 = vmatprep.subr.mxu0 %v3204_v8 }
 0x179   :  { %2134 = vmatprep.subr.mxu1 %v3204_v8  ;;  %2092 = vmatpush3.msra.mxu0 %v2384_v25 }
 0x17a   :  { %2135 = vmatpush3.msk.msra.mxu1 %vm2393_vm12, %v3187_v2  ;;  %2093 = vmatprep.subr.mxu0 %v3204_v8 }
 0x17b   :  { %2136 = vmatprep.subr.mxu1 %v3204_v8  ;;  %2094 = vmatpush3.msra.mxu0 %v2419_v51 }
 0x17c   :  { %2137 = vmatpush3.msk.msra.mxu1 %vm2404_vm13, %v3187_v2  ;;  %2095 = vmatprep.subr.mxu0 %v3204_v8 }
 0x17d   :  { %2138 = vmatprep.subr.mxu1 %v3204_v8  ;;  %2096 = vmatpush3.msra.mxu0 %v2443_v11 }
 0x17e   :  { %2139 = vmatpush3.msk.msra.mxu1 %vm2422_vm14, %v3187_v2  ;;  %2097 = vmatprep.subr.mxu0 %v3204_v8 }
 0x17f   :  { %2140 = vmatprep.subr.mxu1 %v3204_v8  ;;  %2098 = vmatpush3.msra.mxu0 %v2476_v29 }
 0x180   :  { %2141 = vmatpush3.msk.msra.mxu1 %vm2453_vm15, %v3187_v2  ;;  %2099 = vmatprep.subr.mxu0 %v3204_v8 }
 0x181   :  { %2142 = vmatprep.subr.mxu1 %v3204_v8  ;;  %2100 = vmatpush3.msra.mxu0 %v3207_v22 }
 0x182   :  { %2143 = vmatpush3.msk.msra.mxu1 %vm2458_vm0, %v3187_v2  ;;  %2144 = vmatprep.mubr.msk.f32.mxu1 %vm3206_vm1, %v3204_v8  ;;  %v3211_v2 = vld [vmem:[#allocation14_spill] sm:$0xff] }
 0x183   :  { %2101 = vmatprep.subr.mxu0 %v3204_v8  ;;  %2145 = vmatmul.mubr.f32.vlgmr.msra.gmra.mxu1 %v2896_v19 }
 0x184   :  { %2102 = vmatpush3.msra.mxu0 %v3208_v23  ;;  %2109 = vmatprep.mubr.msk.f32.mxu0 %vm3206_vm1, %v3204_v8 }
 0x185   :  { %2103 = vmatprep.subr.mxu0 %v3204_v8 }
 0x186   :  { %2104 = vmatpush3.msra.mxu0 %v3209_v24 }
 0x187   :  { %2105 = vmatprep.subr.mxu0 %v3204_v8 }
 0x188   :  { %2106 = vmatpush3.msra.mxu0 %v3210_v26 }
 0x189   :  { %2107 = vmatprep.subr.mxu0 %v3204_v8 }
 0x18a   :  { %2108 = vmatpush3.msra.mxu0 %v3211_v2 }
 0x18b   :  { %2110 = vmatmul.mubr.f32.vlgmr.msra.gmra.mxu0 %v2896_v19 }
 0x201   :  { %v981_v27 = vpop.f32.mrf.mxu1 }
 0x203   :  { %v2006_v28 = vpop.f32.mrf.mxu1 }
 0x209   :  { %v830_v30 = vpop.f32.mrf.mxu0 }
 0x20a   :  { %v982_v40 = vadd.f32 %v981_v27, %v830_v30 }
 0x20b   :  { %v1971_v31 = vpop.f32.mrf.mxu0 }
 0x221   :  { %v1174_v33 = vpop.f32.mrf.mxu1 }
 0x223   :  { %v2076_v35 = vpop.f32.mrf.mxu1 }
 0x22a   :  { %v1085_v36 = vpop.f32.mrf.mxu0 }
 0x22b   :  { %v1086_v44 = vadd.f32 %v1085_v36, %v982_v40 }
 0x22c   :  { %v2041_v37 = vpop.f32.mrf.mxu0 }
 0x22d   :  { %v1175_v45 = vadd.f32 %v1174_v33, %v1086_v44 }
 0x243   :  { %v1380_v39 = vpop.f32.mrf.mxu1 }
 0x245   :  { %v2146_v43 = vpop.f32.mrf.mxu1 }
 0x24b   :  { %v1293_v48 = vpop.f32.mrf.mxu0 }
 0x24c   :  { %v1294_v53 = vadd.f32 %v1293_v48, %v1175_v45 }
 0x24d   :  { %v2111_v57 = vpop.f32.mrf.mxu0 }
 0x24e   :  { %v1381_v58 = vadd.f32 %v1380_v39, %v1294_v53 }
 0x250   :  { %v1384_v62 = vmul.f32 0.03125, %v1381_v58 }
 0x252   :  { %v1385_v0 = vadd.f32 1e-05, %v1384_v62 }
 0x254   :  { %2150 = vrsqrt.f32 %v1385_v0 }
 0x261   :  { %v2151_v9 = vpop.eup %2150 }
 0x262   :  { %v1387_v16 = vmul.f32 %v2151_v9, %v2892_v1 }
 0x264   :  { %v1395_v25 = vmul.f32 %v1521_v14, %v1387_v16 }
 0x266   :  { %v1403_v34 = vadd.f32 %v1522_v21, %v1395_v25 }
 0x268   :  { %1404 = vst [vmem:[%s3118_s3] sm:$0xff] %v1403_v34 }

</bundles_post_ra>
